<compile_context>
chip_gen: v6e
topology: v6e:2x2x1
jax: 0.10.0
libtpu: 0.0.40
codegen_flags: <defaults>
</compile_context>

<pallas_src>
import functools

import jax
import jax.numpy as jnp
from jax.experimental import pallas as pl
from jax.experimental.pallas import tpu as pltpu

INPUT_DIM = 229      # len(range(1, 230))
HIDDEN_DIM = 100
HIDDEN_DIM2 = 100
OUTPUT_DIM = 1

LANE = 128
SUBLANE = 8

DEFAULT_BLOCK_B = 4096      # batch tile; sweep 2048-8192 per chip
MAX_BLOCK_B = 8192          # v7x VMEM cap (f32 x double-buffer at 8192 ~ 14 MiB)
MIN_PALLAS_BATCH = 256      # below this, plain XLA fusion wins (pure latency)
VMEM_LIMIT_BYTES = 48 * 1024 * 1024   # covers TB=8192 (~35 MiB) w/ headroom; < v7x 64 MiB


def _round_up(n, m):
    return ((n + m - 1) // m) * m


def _batch_dim_semantics(num_tiles):
    """CORE_PARALLEL shards the batch grid axis across v7x's two TensorCores
    (splits the x DMA stream + per-step overhead); on 1-TC chips (v5e/v6e) keep
    the plain "parallel" hint."""
    if num_tiles >= 2:
        try:
            kind = jax.devices()[0].device_kind.lower()
        except Exception:
            kind = ""
        if "v7" in kind or "7x" in kind:
            return (pltpu.CORE_PARALLEL,)
    return ("parallel",)


def mlp_kernel(x_ref, w1_ref, b1_ref, w2_ref, b2_ref, w3_ref, b3_ref, o_ref):
    # fc1 + relu6  (dropout p=0.5 is identity in eval/inference mode).
    # x arrives as raw f32 straight from HBM; the bf16 cast happens here, so
    # the old wrapper pad+cast pass (an extra un-hidden HBM round trip over the
    # dominant stream) is gone.
    xb = x_ref[...].astype(jnp.bfloat16)                           # (TB, 229)
    h1 = jnp.dot(xb, w1_ref[...], preferred_element_type=jnp.float32)
    h1 = jnp.clip(h1 + b1_ref[...], 0.0, 6.0)                      # F.relu6, f32 epilogue
    # fc2 + relu6  (dropout identity in eval).
    h2 = jnp.dot(h1.astype(jnp.bfloat16), w2_ref[...],
                 preferred_element_type=jnp.float32)
    h2 = jnp.clip(h2 + b2_ref[...], 0.0, 6.0)                      # F.relu6
    # fc3 + sigmoid.  OUTPUT_DIM == 1: contract w3 (8, H2p; row 0 real, rows
    # 1..7 zero) against h2 (TB, H2p) over the feature axis so the result is
    # already lane-dense -- no (TB, 1) masked column store and no 128x-padded
    # output VMEM buffer.
    h3 = jax.lax.dot_general(
        w3_ref[...], h2,
        dimension_numbers=(((1,), (1,)), ((), ())),
        preferred_element_type=jnp.float32)[0:1, :]                # (1, TB)
    h3 = h3 + b3_ref[...]                                          # (1,1) broadcasts
    o_ref[...] = jax.nn.sigmoid(h3).reshape(o_ref.shape).astype(o_ref.dtype)


def prepare_params(params):
    """Pad + cast the weights ONCE (outside the per-call hot path)."""
    w1, b1, w2, b2, w3, b3 = params
    f32, bf16 = jnp.float32, jnp.bfloat16
    H1p = _round_up(HIDDEN_DIM, LANE)    # 128
    H2p = _round_up(HIDDEN_DIM2, LANE)   # 128

    # fc1/fc2 weights: bf16, output dim padded to the 128-lane tile.  fc1's K
    # stays at the raw 229 (the MXU masks the ragged contraction).
    w1p = jnp.zeros((INPUT_DIM, H1p), bf16).at[:, :HIDDEN_DIM].set(w1.astype(bf16))
    b1p = jnp.zeros((1, H1p), f32).at[0, :HIDDEN_DIM].set(b1.astype(f32))
    w2p = jnp.zeros((H1p, H2p), bf16).at[:HIDDEN_DIM, :HIDDEN_DIM2].set(w2.astype(bf16))
    b2p = jnp.zeros((1, H2p), f32).at[0, :HIDDEN_DIM2].set(b2.astype(f32))
    # fc3: single output column kept f32, padded to 8 MXU rows (row 0 real,
    # rows 1..7 zero) so the in-kernel dot_general yields a lane-dense (1, TB)
    # output slab directly.
    w3p = jnp.zeros((SUBLANE, H2p), f32).at[0, :HIDDEN_DIM2].set(w3[:, 0].astype(f32))
    b3p = b3.reshape(1, 1).astype(f32)
    return (w1p, b1p, w2p, b2p, w3p, b3p)


@functools.partial(jax.jit, static_argnames=("block_b",))
def _pallas_forward(x, padded_params, block_b=DEFAULT_BLOCK_B):
    """x: (B, INPUT_DIM) float32.  Returns (B, OUTPUT_DIM) float32."""
    w1p, b1p, w2p, b2p, w3p, b3p = padded_params
    B, Din = x.shape
    assert Din == w1p.shape[0], (Din, w1p.shape)

    block_b = min(block_b, MAX_BLOCK_B)
    if block_b % SUBLANE:
        raise ValueError("block_b must be a multiple of 8")
    TB = min(block_b, B)                  # either a multiple of 8 or the full batch
    num_tiles = pl.cdiv(B, TB)

    resident = lambda s: pl.BlockSpec(s, lambda i: (0, 0))   # stays in VMEM across steps

    out = pl.pallas_call(
        mlp_kernel,
        out_shape=jax.ShapeDtypeStruct((num_tiles, 1, TB), jnp.float32),
        grid=(num_tiles,),
        in_specs=[
            # Raw f32 x: full 229-lane extent (legal: equals the full array
            # dim), batch tiled TB rows per grid step, cast in-kernel.
            pl.BlockSpec((TB, Din), lambda i: (i, 0)),
            resident(w1p.shape), resident(b1p.shape),
            resident(w2p.shape), resident(b2p.shape),
            resident(w3p.shape), resident(b3p.shape),
        ],
        # Lane-dense output slab per tile: (1, 1, TB) instead of (TB, 1).
        out_specs=pl.BlockSpec((1, 1, TB), lambda i: (i, 0, 0)),
        compiler_params=pltpu.CompilerParams(
            dimension_semantics=_batch_dim_semantics(num_tiles),
            vmem_limit_bytes=VMEM_LIMIT_BYTES,
        ),
    )(x, w1p, b1p, w2p, b2p, w3p, b3p)

    # (num_tiles, 1, TB) -> (B, 1); rows past B (ragged last tile) are sliced
    # off here, so garbage from the partial input block never escapes.
    return out.reshape(num_tiles * TB, 1)[:B]


def _xla_forward(x, padded_params):
    """Tiny-batch fallback: plain XLA fusion, same math as the kernel."""
    w1p, b1p, w2p, b2p, w3p, b3p = padded_params
    h1 = jnp.dot(x.astype(jnp.bfloat16), w1p, preferred_element_type=jnp.float32)
    h1 = jnp.clip(h1 + b1p, 0.0, 6.0)
    h2 = jnp.dot(h1.astype(jnp.bfloat16), w2p, preferred_element_type=jnp.float32)
    h2 = jnp.clip(h2 + b2p, 0.0, 6.0)
    h3 = jnp.dot(h2, w3p[0:1].T, preferred_element_type=jnp.float32) + b3p
    return jax.nn.sigmoid(h3)


@functools.partial(jax.jit, static_argnames=("block_b", "min_pallas_batch"))
def feedforward_forward(x, padded_params, *, block_b=DEFAULT_BLOCK_B,
                        min_pallas_batch=MIN_PALLAS_BATCH):
    """Public entry: dispatches tiny batches to XLA, the rest to the kernel."""
    if x.shape[0] < min_pallas_batch:
        return _xla_forward(x, padded_params)
    return _pallas_forward(x, padded_params, block_b=block_b)


def init_params(key):
    """Deterministic init mimicking nn.Linear default (U[-1/sqrt(fan_in), +1/sqrt(fan_in)])."""
    ks = jax.random.split(key, 6)

    def linear(kw, kb, fan_in, fan_out):
        bound = 1.0 / jnp.sqrt(jnp.float32(fan_in))
        w = jax.random.uniform(kw, (fan_in, fan_out), jnp.float32, -bound, bound)
        b = jax.random.uniform(kb, (fan_out,), jnp.float32, -bound, bound)
        return w, b

    w1, b1 = linear(ks[0], ks[1], INPUT_DIM, HIDDEN_DIM)
    w2, b2 = linear(ks[2], ks[3], HIDDEN_DIM, HIDDEN_DIM2)
    w3, b3 = linear(ks[4], ks[5], HIDDEN_DIM2, OUTPUT_DIM)
    return (w1, b1, w2, b2, w3, b3)


def reference_forward(x, params, match_bf16):
    """Pure-JAX reference. match_bf16=True mirrors the kernel's bf16 matmul inputs."""
    w1, b1, w2, b2, w3, b3 = params
    if match_bf16:
        bf = jnp.bfloat16
        h = jnp.clip(jnp.dot(x.astype(bf), w1.astype(bf),
                             preferred_element_type=jnp.float32) + b1, 0.0, 6.0)
        h = jnp.clip(jnp.dot(h.astype(bf), w2.astype(bf),
                             preferred_element_type=jnp.float32) + b2, 0.0, 6.0)
    else:
        h = jnp.clip(x @ w1 + b1, 0.0, 6.0)
        h = jnp.clip(h @ w2 + b2, 0.0, 6.0)
    return jax.nn.sigmoid(h @ w3 + b3)


if __name__ == "__main__":
    key = jax.random.PRNGKey(0)
    kx1, kx2, kx3, kp = jax.random.split(key, 4)
    params = init_params(kp)
    padded_params = prepare_params(params)     # pad/cast once, reused every call

    def check(out, x):
        assert out.shape == (x.shape[0], OUTPUT_DIM), out.shape
        ref_match = reference_forward(x, params, match_bf16=True)
        ref_f32 = reference_forward(x, params, match_bf16=False)
        assert jnp.allclose(out, ref_match, atol=4e-3, rtol=1e-3), (out, ref_match)
        assert jnp.allclose(out, ref_f32, atol=5e-2), (out, ref_f32)

    # 1) Tiny batch straight through the Pallas kernel (single full-extent tile).
    x4 = jax.random.normal(kx1, (4, INPUT_DIM), jnp.float32)
    out4 = jax.block_until_ready(_pallas_forward(x4, padded_params))
    check(out4, x4)

    # 2) Multi-tile Pallas path with a ragged last tile (B=300, TB=128, grid=3).
    x300 = jax.random.normal(kx2, (300, INPUT_DIM), jnp.float32)
    out300 = jax.block_until_ready(
        feedforward_forward(x300, padded_params, block_b=128, min_pallas_batch=1))
    check(out300, x300)

    # 3) Small-batch XLA fallback of the public wrapper.
    x64 = jax.random.normal(kx3, (64, INPUT_DIM), jnp.float32)
    out64 = jax.block_until_ready(feedforward_forward(x64, padded_params))
    check(out64, x64)

    print("KERNEL_OK")
</pallas_src>

<mosaic_0001>
module attributes {stable_mosaic.version = 11 : i64} {
  func.func @mlp_kernel(%arg0: i32, %arg1: memref<4x229xf32, #tpu.memory_space<vmem>>, %arg2: memref<229x128xbf16, #tpu.memory_space<vmem>>, %arg3: memref<1x128xf32, #tpu.memory_space<vmem>>, %arg4: memref<128x128xbf16, #tpu.memory_space<vmem>>, %arg5: memref<1x128xf32, #tpu.memory_space<vmem>>, %arg6: memref<8x128xf32, #tpu.memory_space<vmem>>, %arg7: memref<1x1xf32, #tpu.memory_space<vmem>>, %arg8: memref<1x1x4xf32, #tpu.memory_space<vmem>>) attributes {dimension_semantics = [#tpu.dimension_semantics<parallel>], iteration_bounds = array<i64: 1>, scalar_prefetch = 0 : i64, scratch_operands = 0 : i64, tpu.core_type = #tpu.core_type<tc>, window_params = [{transform_indices = @transform_0, window_bounds = array<i64: 4, 229>}, {pipeline_mode = #tpu.pipeline_mode<synchronous>, transform_indices = @transform_1, window_bounds = array<i64: 229, 128>}, {pipeline_mode = #tpu.pipeline_mode<synchronous>, transform_indices = @transform_2, window_bounds = array<i64: 1, 128>}, {pipeline_mode = #tpu.pipeline_mode<synchronous>, transform_indices = @transform_3, window_bounds = array<i64: 128, 128>}, {pipeline_mode = #tpu.pipeline_mode<synchronous>, transform_indices = @transform_4, window_bounds = array<i64: 1, 128>}, {pipeline_mode = #tpu.pipeline_mode<synchronous>, transform_indices = @transform_5, window_bounds = array<i64: 8, 128>}, {pipeline_mode = #tpu.pipeline_mode<synchronous>, transform_indices = @transform_6, window_bounds = array<i64: 1, 1>}, {transform_indices = @transform_7, window_bounds = array<i64: 1, 1, 4>}]} {
    %c0 = arith.constant 0 : index
    %c0_0 = arith.constant 0 : index
    %0 = vector.load %arg1[%c0, %c0_0] : memref<4x229xf32, #tpu.memory_space<vmem>>, vector<4x229xf32>
    %1 = arith.truncf %0 : vector<4x229xf32> to vector<4x229xbf16>
    %c0_1 = arith.constant 0 : index
    %c0_2 = arith.constant 0 : index
    %2 = vector.load %arg2[%c0_1, %c0_2] : memref<229x128xbf16, #tpu.memory_space<vmem>>, vector<229x128xbf16>
    %cst = arith.constant dense<0.000000e+00> : vector<4x128xf32>
    %3 = tpu.matmul %1, %2, %cst {dimension_numbers = #tpu.dot_dimension_numbers<[1], [0], [0], [1], [0, 0, 1, 1], [], []>} : vector<4x229xbf16>, vector<229x128xbf16>, vector<4x128xf32> -> vector<4x128xf32>
    %c0_3 = arith.constant 0 : index
    %c0_4 = arith.constant 0 : index
    %4 = vector.load %arg3[%c0_3, %c0_4] : memref<1x128xf32, #tpu.memory_space<vmem>>, vector<1x128xf32>
    %5 = vector.broadcast %4 : vector<1x128xf32> to vector<4x128xf32>
    %6 = arith.addf %3, %5 : vector<4x128xf32>
    %cst_5 = arith.constant 0.000000e+00 : f32
    %cst_6 = arith.constant 6.000000e+00 : f32
    %7 = vector.broadcast %cst_5 : f32 to vector<4x128xf32>
    %8 = arith.maximumf %7, %6 : vector<4x128xf32>
    %9 = vector.broadcast %cst_6 : f32 to vector<4x128xf32>
    %10 = arith.minimumf %9, %8 : vector<4x128xf32>
    %11 = arith.truncf %10 : vector<4x128xf32> to vector<4x128xbf16>
    %c0_7 = arith.constant 0 : index
    %c0_8 = arith.constant 0 : index
    %12 = vector.load %arg4[%c0_7, %c0_8] : memref<128x128xbf16, #tpu.memory_space<vmem>>, vector<128x128xbf16>
    %cst_9 = arith.constant dense<0.000000e+00> : vector<4x128xf32>
    %13 = tpu.matmul %11, %12, %cst_9 {dimension_numbers = #tpu.dot_dimension_numbers<[1], [0], [0], [1], [0, 0, 1, 1], [], []>} : vector<4x128xbf16>, vector<128x128xbf16>, vector<4x128xf32> -> vector<4x128xf32>
    %c0_10 = arith.constant 0 : index
    %c0_11 = arith.constant 0 : index
    %14 = vector.load %arg5[%c0_10, %c0_11] : memref<1x128xf32, #tpu.memory_space<vmem>>, vector<1x128xf32>
    %15 = vector.broadcast %14 : vector<1x128xf32> to vector<4x128xf32>
    %16 = arith.addf %13, %15 : vector<4x128xf32>
    %cst_12 = arith.constant 0.000000e+00 : f32
    %cst_13 = arith.constant 6.000000e+00 : f32
    %17 = vector.broadcast %cst_12 : f32 to vector<4x128xf32>
    %18 = arith.maximumf %17, %16 : vector<4x128xf32>
    %19 = vector.broadcast %cst_13 : f32 to vector<4x128xf32>
    %20 = arith.minimumf %19, %18 : vector<4x128xf32>
    %c0_14 = arith.constant 0 : index
    %c0_15 = arith.constant 0 : index
    %21 = vector.load %arg6[%c0_14, %c0_15] : memref<8x128xf32, #tpu.memory_space<vmem>>, vector<8x128xf32>
    %cst_16 = arith.constant dense<0.000000e+00> : vector<8x4xf32>
    %22 = tpu.matmul %21, %20, %cst_16 {dimension_numbers = #tpu.dot_dimension_numbers<[1], [1], [0], [0], [0, 0, 1, 0], [], []>} : vector<8x128xf32>, vector<4x128xf32>, vector<8x4xf32> -> vector<8x4xf32>
    %23 = vector.extract_strided_slice %22 {offsets = [0, 0], sizes = [1, 4], strides = [1, 1]} : vector<8x4xf32> to vector<1x4xf32>
    %c0_17 = arith.constant 0 : index
    %c0_18 = arith.constant 0 : index
    %24 = vector.load %arg7[%c0_17, %c0_18] : memref<1x1xf32, #tpu.memory_space<vmem>>, vector<1x1xf32>
    %25 = vector.broadcast %24 : vector<1x1xf32> to vector<1x4xf32>
    %26 = arith.addf %23, %25 : vector<1x4xf32>
    %27 = arith.negf %26 : vector<1x4xf32>
    %28 = math.exp %27 : vector<1x4xf32>
    %cst_19 = arith.constant 1.000000e+00 : f32
    %29 = vector.broadcast %cst_19 : f32 to vector<1x4xf32>
    %30 = arith.addf %29, %28 : vector<1x4xf32>
    %31 = arith.divf %29, %30 : vector<1x4xf32>
    %32 = vector.shape_cast %31 : vector<1x4xf32> to vector<1x1x4xf32>
    %c0_20 = arith.constant 0 : index
    %c0_21 = arith.constant 0 : index
    %c0_22 = arith.constant 0 : index
    %33 = vector.load %arg8[%c0_20, %c0_21, %c0_22] : memref<1x1x4xf32, #tpu.memory_space<vmem>>, vector<1x1x4xf32>
    tpu.vector_store %arg8[%c0_20, %c0_21, %c0_22], %32 {strides = array<i32>} : memref<1x1x4xf32, #tpu.memory_space<vmem>>, vector<1x1x4xf32>,
    return
  }
  func.func @transform_0(%arg0: i32) -> (i32, i32) {
    %c0_i32 = arith.constant 0 : i32
    %c0_i32_0 = arith.constant 0 : i32
    return %arg0, %c0_i32 : i32, i32
  }
  func.func @transform_1(%arg0: i32) -> (i32, i32) {
    %c0_i32 = arith.constant 0 : i32
    %c0_i32_0 = arith.constant 0 : i32
    %c0_i32_1 = arith.constant 0 : i32
    return %c0_i32, %c0_i32_0 : i32, i32
  }
  func.func @transform_2(%arg0: i32) -> (i32, i32) {
    %c0_i32 = arith.constant 0 : i32
    %c0_i32_0 = arith.constant 0 : i32
    %c0_i32_1 = arith.constant 0 : i32
    return %c0_i32, %c0_i32_0 : i32, i32
  }
  func.func @transform_3(%arg0: i32) -> (i32, i32) {
    %c0_i32 = arith.constant 0 : i32
    %c0_i32_0 = arith.constant 0 : i32
    %c0_i32_1 = arith.constant 0 : i32
    return %c0_i32, %c0_i32_0 : i32, i32
  }
  func.func @transform_4(%arg0: i32) -> (i32, i32) {
    %c0_i32 = arith.constant 0 : i32
    %c0_i32_0 = arith.constant 0 : i32
    %c0_i32_1 = arith.constant 0 : i32
    return %c0_i32, %c0_i32_0 : i32, i32
  }
  func.func @transform_5(%arg0: i32) -> (i32, i32) {
    %c0_i32 = arith.constant 0 : i32
    %c0_i32_0 = arith.constant 0 : i32
    %c0_i32_1 = arith.constant 0 : i32
    return %c0_i32, %c0_i32_0 : i32, i32
  }
  func.func @transform_6(%arg0: i32) -> (i32, i32) {
    %c0_i32 = arith.constant 0 : i32
    %c0_i32_0 = arith.constant 0 : i32
    %c0_i32_1 = arith.constant 0 : i32
    return %c0_i32, %c0_i32_0 : i32, i32
  }
  func.func @transform_7(%arg0: i32) -> (i32, i32, i32) {
    %c0_i32 = arith.constant 0 : i32
    %c0_i32_0 = arith.constant 0 : i32
    %c0_i32_1 = arith.constant 0 : i32
    return %arg0, %c0_i32, %c0_i32_0 : i32, i32, i32
  }
}

</mosaic_0001>

<bundles_post_ra>
// kernel: _pallas_forward.1
= control target key start
LH: loop header
LB: loop body
LE: loop exit
PB: predicated region body
PF: predicated region fallthrough
CT: control target
= control target key end

     0   :  { %s760_s0 = inlined_call_operand.hbm [shape: f32[4,229], index: 0, kind: input, shape index: {}]   ;;  %s761_s1 = inlined_call_operand.hbm [shape: bf16[229,128], index: 1, kind: input, shape index: {}]   ;;  %s762_s2 = inlined_call_operand.vmem [shape: f32[1,128], index: 2, kind: input, shape index: {}]   ;;  %s763_s3 = inlined_call_operand.hbm [shape: bf16[128,128], index: 3, kind: input, shape index: {}]   ;;  %s764_s4 = inlined_call_operand.vmem [shape: f32[1,128], index: 4, kind: input, shape index: {}]   ;;  %s765_s5 = inlined_call_operand.vmem [shape: f32[8,128], index: 5, kind: input, shape index: {}]   ;;  %s766_s6 = inlined_call_operand.<no memory space> [shape: f32[1,1], index: 6, kind: input, shape index: {}]   ;;  %s767_s7 = inlined_call_operand.hbm [shape: f32[1,1,4], index: 7, kind: output, shape index: {}]  }
   0x1   :  { %v12_v0 = vstv %s766_s6 }
   0x2   :  { %13 = vst [vmem:[#allocation2] sm:$0x1] %v12_v0 }
   0x3   :  { %14 = vsyncpa [#allocation4], 0 }
   0x4   :  { %15 = vsyncpa [#allocation7], 0 }
   0x5   :  { %16 = vsyncpa [#allocation5], 0  ;;  %s659_s26 = smov [#allocation6]  }
   0x6   :  { %s32_s27 = sshll.u32 %s659_s26, 4  ;;  %s33_s27 = int_to_ptr.vmem [resolvable:$true] %s32_s27 }
   0x7   :  { %s581_s28 = scalar_lea.vmem %s33_s27, 1856  ;;  %p586_p1 = scmp.lt.s32.totalorder %s33_s27, %s33_s27 }
   0x8   :  { %p582_p0 = scmp.ne.s32.totalorder %s33_s27, %s581_s28  ;;  %p587_p2 = scmp.lt.s32.totalorder %s581_s28, %s581_s28 }
   0xa   :  { %p588_p3 = por %p587_p2, %p586_p1 }
   0xc   :  { %p589_p4 = pnand %p588_p3, %p582_p0 }
   0xe   :  { %592 = shalt.err (!%p589_p4)
}
   0xf   :  { %s660_s29 = smov 64   ;;  %s661_s30 = smov 4  }
  0x10   :  { %38 = dma.hbm_to_vmem [thread:$0]  %s761_s1, 1856, %s33_s27, [#allocation7], %s660_s29, %s660_s29, %s661_s30  }
  0x11   :  { %s662_s6 = smov [#allocation3]   ;;  %s663_s11 = smov [#allocation8]  }
  0x12   :  { %s23_s10 = sshll.u32 %s662_s6, 4  ;;  %s46_s12 = sshll.u32 %s663_s11, 4  ;;  %s24_s10 = int_to_ptr.vmem [resolvable:$true] %s23_s10  ;;  %s47_s12 = int_to_ptr.vmem [resolvable:$true] %s46_s12 }
  0x13   :  { %s601_s13 = scalar_lea.vmem %s24_s10, 128  ;;  %p606_p6 = scmp.lt.s32.totalorder %s24_s10, %s24_s10 }
  0x14   :  { %p602_p5 = scmp.ne.s32.totalorder %s24_s10, %s601_s13  ;;  %p607_p7 = scmp.lt.s32.totalorder %s601_s13, %s601_s13 }
  0x16   :  { %p608_p8 = por %p607_p7, %p606_p6 }
  0x18   :  { %p609_p9 = pnand %p608_p8, %p602_p5 }
  0x1a   :  { %612 = shalt.err (!%p609_p9)
}
  0x1b   :  { %26 = dma.hbm_to_vmem [thread:$0]  %s760_s0, 128, %s24_s10, [#allocation4]  }
  0x1c   :  { %s621_s16 = scalar_lea.vmem %s47_s12, 1024  ;;  %p626_p11 = scmp.lt.s32.totalorder %s47_s12, %s47_s12 }
  0x1d   :  { %p622_p10 = scmp.ne.s32.totalorder %s47_s12, %s621_s16  ;;  %p627_p12 = scmp.lt.s32.totalorder %s621_s16, %s621_s16 }
  0x1f   :  { %p628_p13 = por %p627_p12, %p626_p11 }
  0x21   :  { %p629_p0 = pnand %p628_p13, %p622_p10 }
  0x23   :  { %632 = shalt.err (!%p629_p0)
}
  0x24   :  { %52 = dma.hbm_to_vmem [thread:$0]  %s763_s3, 1024, %s47_s12, [#allocation7], %s660_s29, %s660_s29, %s661_s30  }
  0x25   :  { %653 = dma.done.wait [#allocation4], 128  }
  0x26   :  { %654 = vsyncadd [#allocation4], 4294967168 }
  0x27   :  { %655 = dma.done.wait [#allocation7], 2880  }
  0x28   :  { %656 = vsyncadd [#allocation7], 4294964416  ;;  %v664_v1 = vmov 0   ;;  %v665_v2 = vmov 0.0   ;;  %v545_v3 = vld [vmem:[#allocation6 + $0x38] sm:$0xff]   ;;  %v546_v4 = vld [vmem:[#allocation6 + $0x30] sm:$0xff]   ;;  %v442_v53 = vlaneseq }
  0x29   :  { %209 = vmatprep.subr.bf16.mxu0 %v664_v1  ;;  %544 = vset.pattern.permute.xlu0 %v664_v1  ;;  %v547_v5 = vld [vmem:[#allocation6 + $0x28] sm:$0xff]   ;;  %v548_v6 = vld [vmem:[#allocation6 + $0x20] sm:$0xff]   ;;  %v549_v7 = vld [vmem:[#allocation6 + $0x18] sm:$0xff]   ;;  %vm198_vm0 = vcmask 826368   ;;  %vm202_vm1 = vcmask 1041408   ;;  %vm203_vm2 = vcmask 1042432  }
  0x2a   :  { %509 = vmatprep.subr.bf16.mxu1 %v665_v2  ;;  %210 = vmatpush1.bf16.msra.mxu0 %v545_v3  ;;  %v69_v8 = vld [vmem:[#allocation3] sm:$0xff]  ;;  %v561_v10 = vld [vmem:[#allocation8 + $0x38] sm:$0xff]   ;;  %v562_v12 = vld [vmem:[#allocation8 + $0x30] sm:$0xff]   ;;  %v666_v16 = vmov 65535   ;;  %vm667_vm3 = vmmov 0   ;;  %v443_v54 = vshrl.u32 %v442_v53, 7 }
  0x2b   :  { %211 = vmatprep.subr.bf16.mxu0 %v664_v1  ;;  %v71_v9 = vcombine.high %v69_v8, %v69_v8  ;;  %510 = vmatpush3.bf16.msra.mxu1 %v561_v10  ;;  %v550_v13 = vld [vmem:[#allocation6 + $0x10] sm:$0xff]   ;;  %v563_v14 = vld [vmem:[#allocation8 + $0x28] sm:$0xff]   ;;  %v551_v15 = vld [vmem:[#allocation6 + $0x8] sm:$0xff]   ;;  %v204_v17 = vsel %vm202_vm1, 4294967295, %v666_v16  ;;  %v73_v31 = vpack.c.bf16 %v69_v8, %v69_v8  ;;  %vm453_vm4 = vcmask 24576  }
  0x2c   :  { %511 = vmatprep.subr.bf16.mxu1 %v665_v2  ;;  %v564_v18 = vld [vmem:[#allocation8 + $0x20] sm:$0xff]   ;;  %v552_v19 = vld [vmem:[#allocation6] sm:$0xff]   ;;  %v553_v20 = vld [vmem:[#allocation6 + $0x70] ss:$0 sps:$4 sm:$0x77]   ;;  %v205_v21 = vsel %vm203_vm2, %v204_v17, 0  ;;  %525 = vmatprep.mubr.msk.bf16.mxu1 %vm667_vm3, %v665_v2 }
  0x2d   :  { %v74_v11 = vpack.c.bf16 %v71_v9, %v71_v9  ;;  %v565_v22 = vld [vmem:[#allocation8 + $0x18] sm:$0xff]   ;;  %v207_v23 = vand.u32 %v553_v20, %v205_v21  ;;  %v566_v24 = vld [vmem:[#allocation8 + $0x10] sm:$0xff]   ;;  %v556_v27 = vld [vmem:[#allocation6 + $0x58] sm:$0xff]   ;;  %v444_v55 = vsub.s32 0, %v443_v54 }
  0x2e   :  { %212 = vmatpush1.bf16.msra.mxu0 %v546_v4  ;;  %v554_v25 = vld [vmem:[#allocation6 + $0x68] sm:$0xff]   ;;  %v555_v26 = vld [vmem:[#allocation6 + $0x60] sm:$0xff]   ;;  %v557_v28 = vld [vmem:[#allocation6 + $0x50] sm:$0xff]  }
  0x2f   :  { %213 = vmatprep.subr.bf16.mxu0 %v664_v1  ;;  %487 = vmatprep.mubr.msk.bf16.mxu0 %vm198_vm0, %v74_v11  ;;  %v558_v29 = vld [vmem:[#allocation6 + $0x48] sm:$0xff]   ;;  %v559_v30 = vld [vmem:[#allocation6 + $0x40] sm:$0xff]   ;;  %v568_v33 = vld [vmem:[#allocation8] sm:$0xff]  }
  0x30   :  { %512 = vmatpush3.bf16.msra.mxu1 %v562_v12  ;;  %v567_v32 = vld [vmem:[#allocation8 + $0x8] sm:$0xff]   ;;  %v471_v34 = vld [vmem:[%s762_s2] ss:$0 sm:$0xff] }
  0x31   :  { %513 = vmatprep.subr.bf16.mxu1 %v665_v2  ;;  %v436_v43 = vld [vmem:[#allocation2] sm:$0x1] }
  0x32   :  { %214 = vmatpush1.bf16.msra.mxu0 %v547_v5  ;;  %439 = vperm.xlu0 %544, %v436_v43   ;;  %v488_v44 = vld [vmem:[%s764_s4] ss:$0 sm:$0xff]  ;;  %s668_s4 = smov [#allocation9]  }
  0x33   :  { %215 = vmatprep.subr.bf16.mxu0 %v664_v1  ;;  %v365_v52 = vld [vmem:[%s765_s5] sm:$0xff]  ;;  %s461_s21 = sshll.u32 %s668_s4, 4  ;;  %s462_s21 = int_to_ptr.vmem [resolvable:$true] %s461_s21 }
  0x34   :  { %514 = vmatpush3.bf16.msra.mxu1 %v563_v14  ;;  %s633_s5 = scalar_lea.vmem %s462_s21, 16  ;;  %s637_s22 = scalar_lea.vmem %s462_s21, 32 }
  0x35   :  { %515 = vmatprep.subr.bf16.mxu1 %v665_v2  ;;  %p634_p1 = scmp.ne.s32.totalorder %s462_s21, %s633_s5  ;;  %p638_p2 = scmp.lt.s32.totalorder %s462_s21, %s462_s21 }
  0x36   :  { %216 = vmatpush1.bf16.msra.mxu0 %v548_v6  ;;  %p639_p3 = scmp.lt.s32.totalorder %s637_s22, %s633_s5 }
  0x37   :  { %217 = vmatprep.subr.bf16.mxu0 %v664_v1 }
  0x38   :  { %516 = vmatpush3.bf16.msra.mxu1 %v564_v18  ;;  %p640_p4 = por %p639_p3, %p638_p2 }
  0x39   :  { %517 = vmatprep.subr.bf16.mxu1 %v665_v2 }
  0x3a   :  { %218 = vmatpush1.bf16.msra.mxu0 %v549_v7  ;;  %p641_p5 = pnand %p640_p4, %p634_p1 }
  0x3b   :  { %219 = vmatprep.subr.bf16.mxu0 %v664_v1 }
  0x3c   :  { %518 = vmatpush3.bf16.msra.mxu1 %v565_v22 }
  0x3d   :  { %519 = vmatprep.subr.bf16.mxu1 %v665_v2 }
  0x3e   :  { %220 = vmatpush1.bf16.msra.mxu0 %v550_v13 }
  0x3f   :  { %221 = vmatprep.subr.bf16.mxu0 %v664_v1 }
  0x40   :  { %520 = vmatpush3.bf16.msra.mxu1 %v566_v24 }
  0x41   :  { %521 = vmatprep.subr.bf16.mxu1 %v665_v2 }
  0x42   :  { %222 = vmatpush1.bf16.msra.mxu0 %v551_v15 }
  0x43   :  { %223 = vmatprep.subr.bf16.mxu0 %v664_v1 }
  0x44   :  { %522 = vmatpush3.bf16.msra.mxu1 %v567_v32 }
  0x45   :  { %523 = vmatprep.subr.bf16.mxu1 %v665_v2 }
  0x46   :  { %224 = vmatpush1.bf16.msra.mxu0 %v552_v19 }
  0x47   :  { %227 = vmatprep.subr.bf16.mxu0 %v664_v1 }
  0x48   :  { %524 = vmatpush3.bf16.msra.mxu1 %v568_v33 }
  0x49   :  { %529 = vmatprep.subr.mxu1 %v665_v2 }
  0x4a   :  { %228 = vmatpush2.bf16.msra.mxu0 %v207_v23 }
  0x4b   :  { %229 = vmatprep.subr.bf16.mxu0 %v664_v1 }
  0x4e   :  { %230 = vmatpush2.bf16.msra.mxu0 %v554_v25 }
  0x4f   :  { %231 = vmatprep.subr.bf16.mxu0 %v664_v1 }
  0x52   :  { %232 = vmatpush2.bf16.msra.mxu0 %v555_v26 }
  0x53   :  { %233 = vmatprep.subr.bf16.mxu0 %v664_v1 }
  0x56   :  { %234 = vmatpush2.bf16.msra.mxu0 %v556_v27 }
  0x57   :  { %235 = vmatprep.subr.bf16.mxu0 %v664_v1 }
  0x5a   :  { %236 = vmatpush2.bf16.msra.mxu0 %v557_v28 }
  0x5b   :  { %237 = vmatprep.subr.bf16.mxu0 %v664_v1 }
  0x5e   :  { %238 = vmatpush2.bf16.msra.mxu0 %v558_v29 }
  0x5f   :  { %239 = vmatprep.subr.bf16.mxu0 %v664_v1 }
  0x62   :  { %240 = vmatpush2.bf16.msra.mxu0 %v559_v30 }
  0x65   :  { %242 = vmatmul.mubr.bf16.vlgmr.msra.gmra.mxu0 %v73_v31 }
  0xad   :  { %v440_v56 = vpop.permute.xlu0 %439 }
  0xae   :  { %v445_v57 = vrot.slane %v440_v56, %v444_v55 }
 0x125   :  { %v243_v35 = vpop.f32.mrf.mxu0 }
 0x126   :  { %v244_v36 = vadd.f32 %v471_v34, %v243_v35 }
 0x127   :  { %v245_v37 = vpop.f32.mrf.mxu0 }
 0x128   :  { %v249_v38 = vmax.f32 %v244_v36, 0.0 }
 0x129   :  { %v246_v39 = vpop.f32.mrf.mxu0 }
 0x12a   :  { %v250_v40 = vmin.f32 %v249_v38, 6.0 }
 0x12b   :  { %v247_v41 = vpop.f32.mrf.mxu0 }
 0x12c   :  { %v251_v42 = vpack.c.bf16 %v250_v40, %v250_v40 }
 0x12e   :  { %526 = vmatmul.mubr.bf16.vlgmr.msra.gmra.mxu1 %v251_v42 }
 0x12f   :  { %531 = vmatprep.mubr.msk.f32.mxu1 %vm667_vm3, %v665_v2 }
 0x1ee   :  { %v357_v45 = vpop.f32.mrf.mxu1 }
 0x1ef   :  { %v358_v46 = vadd.f32 %v488_v44, %v357_v45 }
 0x1f0   :  { %v527_v47 = vpop.f32.mrf.mxu1 }
 0x1f1   :  { %v363_v48 = vmax.f32 %v358_v46, 0.0 }
 0x1f2   :  { %v360_v49 = vpop.f32.mrf.mxu1 }
 0x1f3   :  { %v364_v50 = vmin.f32 %v363_v48, 6.0 }
 0x1f4   :  { %v528_v51 = vpop.f32.mrf.mxu1 }
 0x1f5   :  { %530 = vmatpush3.xpose.msra.mxu1 %v364_v50 }
 0x1f8   :  { %532 = vmatmul.mubr.f32.vlgmr.msra.gmra.mxu1 %v365_v52 }
 0x2b8   :  { %v432_v58 = vpop.f32.mrf.mxu1 }
 0x2b9   :  { %v446_v59 = vadd.f32 %v445_v57, %v432_v58 }
 0x2ba   :  { %v533_v60 = vpop.f32.mrf.mxu1 }
 0x2bb   :  { %v497_v61 = vmul.f32 -1.442695, %v446_v59 }
 0x2bd   :  { %569 = vpow2.f32 %v497_v61 }
 0x2ca   :  { %v570_v62 = vpop.eup %569 }
 0x2cb   :  { %v450_v63 = vadd.f32 1.0, %v570_v62 }
 0x2cd   :  { %571 = vrcp.f32 %v450_v63 }
 0x2da   :  { %v572_v0 = vpop.eup %571 }
 0x2db   :  { %454 = vst.msk [vmem:[#allocation9] sm:$0x1] %vm453_vm4, %v572_v0 }
 0x2dc   :  { %644 = shalt.err (!%p641_p5)
}
 0x2dd   :  { %464 = dma.vmem_to_hbm [thread:$0]  %s462_s21, 16, %s767_s7, [#allocation5]  }
 0x2de   :  { %657 = dma.done.wait [#allocation5], 16  }
 0x2df   :  { %658 = vsyncadd [#allocation5], 4294967280 }
 0x2e0   :  { %468 = vsyncpa [#allocation4], 1 }
 0x2e1   :  { %469 = vsyncpa [#allocation7], 1 }
 0x2e2   :  { %470 = vsyncpa [#allocation5], 1 }

</bundles_post_ra>
